<compile_context>
chip_gen: v7x
topology: tpu7x:2x2x1
jax: 0.10.0
libtpu: 0.0.40
codegen_flags: <defaults>
</compile_context>

<pallas_src>
import math

import jax
import jax.numpy as jnp
from jax.experimental import pallas as pl
from jax.experimental.pallas import tpu as pltpu

IN_FEATURES = 17 * 17    # 289
OUT_FEATURES = 17 * 2    # 34


def graph_conv_net_linear(x, w_t, b, *, tile_b=2048, precision=None,
                          use_bf16_inputs=False, core_parallel=False):
    """x: (B, 17, 17); w_t: (289, 34); b: (1, 34). Returns (B, 34) f32."""
    B = x.shape[0]
    x_flat = jnp.reshape(x, (B, IN_FEATURES))  # glue: torch.flatten(x, 1)

    if use_bf16_inputs:
        # Halves dominant x-read HBM traffic; accumulation stays f32.
        x_flat = x_flat.astype(jnp.bfloat16)
        w_t = w_t.astype(jnp.bfloat16)

    # Batch tile: big enough to amortize per-step overhead, multiple of 8
    # sublanes, never larger than needed for tiny B (B=2 -> one partial tile).
    TB = min(int(tile_b), ((B + 7) // 8) * 8)
    grid = (pl.cdiv(B, TB),)

    def _linear_kernel(x_ref, w_ref, b_ref, o_ref):
        # One (TB, 289) x tile @ resident (289, 34) weight + (1, 34) bias.
        acc = jnp.dot(x_ref[...], w_ref[...],
                      preferred_element_type=jnp.float32,
                      precision=precision)
        o_ref[...] = (acc + b_ref[...]).astype(o_ref.dtype)

    batch_sem = pltpu.CORE_PARALLEL if core_parallel else "parallel"

    cost = pl.CostEstimate(
        flops=2 * B * IN_FEATURES * OUT_FEATURES,
        transcendentals=0,
        bytes_accessed=(B * IN_FEATURES * x_flat.dtype.itemsize   # x reads
                        + IN_FEATURES * OUT_FEATURES * w_t.dtype.itemsize
                        + OUT_FEATURES * 4                        # bias
                        + B * OUT_FEATURES * 4),                  # output
    )

    out = pl.pallas_call(
        _linear_kernel,
        out_shape=jax.ShapeDtypeStruct((B, OUT_FEATURES), jnp.float32),
        grid_spec=pltpu.PrefetchScalarGridSpec(
            num_scalar_prefetch=0,
            grid=grid,
            in_specs=[
                # TODO(synk): if a profile shows exposed DMA on the x stream at
                # large TB, add pipeline_mode=pl.Buffered(3) here.
                pl.BlockSpec((TB, IN_FEATURES), lambda i: (i, 0)),
                pl.BlockSpec((IN_FEATURES, OUT_FEATURES), lambda i: (0, 0)),
                pl.BlockSpec((1, OUT_FEATURES), lambda i: (0, 0)),
            ],
            out_specs=pl.BlockSpec((TB, OUT_FEATURES), lambda i: (i, 0)),
        ),
        compiler_params=pltpu.CompilerParams(
            dimension_semantics=(batch_sem,),
            vmem_limit_bytes=48 * 1024 * 1024,
        ),
        cost_estimate=cost,
    )(x_flat, w_t, b)

    return out


def init_params(key):
    """Deterministic init matching nn.Linear(289, 34) default (kaiming uniform)."""
    kw, kb = jax.random.split(key)
    bound = 1.0 / math.sqrt(IN_FEATURES)
    # PyTorch weight is (out, in); store its transpose (in, out) for the kernel.
    w = jax.random.uniform(
        kw, (OUT_FEATURES, IN_FEATURES), jnp.float32, minval=-bound, maxval=bound
    )
    b = jax.random.uniform(
        kb, (OUT_FEATURES,), jnp.float32, minval=-bound, maxval=bound
    )
    return w.T, b.reshape(1, OUT_FEATURES)


if __name__ == "__main__":
    key = jax.random.PRNGKey(0)
    k_param, k_x = jax.random.split(key)

    w_t, b = init_params(k_param)

    B = 2
    x = jax.random.normal(k_x, (B, 17, 17), dtype=jnp.float32)

    out = graph_conv_net_linear(x, w_t, b)
    out = jax.block_until_ready(out)

    # sanity check against plain-JAX reference (same default matmul precision)
    ref = jnp.reshape(x, (B, -1)) @ w_t + b
    assert out.shape == (B, OUT_FEATURES)
    assert jnp.allclose(out, ref, atol=1e-5, rtol=1e-5)

    print("KERNEL_OK")
</pallas_src>

<mosaic_0001>
module attributes {stable_mosaic.version = 11 : i64} {
  func.func @_linear_kernel(%arg0: i32, %arg1: memref<8x289xf32, #tpu.memory_space<vmem>>, %arg2: memref<289x34xf32, #tpu.memory_space<vmem>>, %arg3: memref<1x34xf32, #tpu.memory_space<vmem>>, %arg4: memref<8x34xf32, #tpu.memory_space<vmem>>) attributes {dimension_semantics = [#tpu.dimension_semantics<parallel>], iteration_bounds = array<i64: 1>, scalar_prefetch = 0 : i64, scratch_operands = 0 : i64, tpu.core_type = #tpu.core_type<tc>, window_params = [{transform_indices = @transform_0, window_bounds = array<i64: 8, 289>}, {pipeline_mode = #tpu.pipeline_mode<synchronous>, transform_indices = @transform_1, window_bounds = array<i64: 289, 34>}, {pipeline_mode = #tpu.pipeline_mode<synchronous>, transform_indices = @transform_2, window_bounds = array<i64: 1, 34>}, {transform_indices = @transform_3, window_bounds = array<i64: 8, 34>}]} {
    %c0 = arith.constant 0 : index
    %c0_0 = arith.constant 0 : index
    %0 = vector.load %arg1[%c0, %c0_0] : memref<8x289xf32, #tpu.memory_space<vmem>>, vector<8x289xf32>
    %c0_1 = arith.constant 0 : index
    %c0_2 = arith.constant 0 : index
    %1 = vector.load %arg2[%c0_1, %c0_2] : memref<289x34xf32, #tpu.memory_space<vmem>>, vector<289x34xf32>
    %cst = arith.constant dense<0.000000e+00> : vector<8x34xf32>
    %2 = tpu.matmul %0, %1, %cst {dimension_numbers = #tpu.dot_dimension_numbers<[1], [0], [0], [1], [0, 0, 1, 1], [], []>} : vector<8x289xf32>, vector<289x34xf32>, vector<8x34xf32> -> vector<8x34xf32>
    %c0_3 = arith.constant 0 : index
    %c0_4 = arith.constant 0 : index
    %3 = vector.load %arg3[%c0_3, %c0_4] : memref<1x34xf32, #tpu.memory_space<vmem>>, vector<1x34xf32>
    %4 = vector.broadcast %3 : vector<1x34xf32> to vector<8x34xf32>
    %5 = arith.addf %2, %4 : vector<8x34xf32>
    %c0_5 = arith.constant 0 : index
    %c0_6 = arith.constant 0 : index
    %6 = vector.load %arg4[%c0_5, %c0_6] : memref<8x34xf32, #tpu.memory_space<vmem>>, vector<8x34xf32>
    tpu.vector_store %arg4[%c0_5, %c0_6], %5 {strides = array<i32>} : memref<8x34xf32, #tpu.memory_space<vmem>>, vector<8x34xf32>,
    return
  }
  func.func @transform_0(%arg0: i32) -> (i32, i32) {
    %c0_i32 = arith.constant 0 : i32
    %c0_i32_0 = arith.constant 0 : i32
    return %arg0, %c0_i32 : i32, i32
  }
  func.func @transform_1(%arg0: i32) -> (i32, i32) {
    %c0_i32 = arith.constant 0 : i32
    %c0_i32_0 = arith.constant 0 : i32
    %c0_i32_1 = arith.constant 0 : i32
    return %c0_i32, %c0_i32_0 : i32, i32
  }
  func.func @transform_2(%arg0: i32) -> (i32, i32) {
    %c0_i32 = arith.constant 0 : i32
    %c0_i32_0 = arith.constant 0 : i32
    %c0_i32_1 = arith.constant 0 : i32
    return %c0_i32, %c0_i32_0 : i32, i32
  }
  func.func @transform_3(%arg0: i32) -> (i32, i32) {
    %c0_i32 = arith.constant 0 : i32
    %c0_i32_0 = arith.constant 0 : i32
    return %arg0, %c0_i32 : i32, i32
  }
}

</mosaic_0001>

<bundles_post_ra>
// kernel: tpu_custom_call.1
= control target key start
LH: loop header
LB: loop body
LE: loop exit
PB: predicated region body
PF: predicated region fallthrough
CT: control target
= control target key end

     0   :  { %8 = vsyncpa [#allocation3], 0  ;;  %v401_v6 = vmov 0.0|0.0   ;;  %v402_v14 = vmov 1983009808   ;;  %v74_v16 = vlaneseq  ;;  %vm403_vm0 = vmmov 0   ;;  %s566_s0 = inlined_call_operand.vmem [shape: f32[2,289], index: 0, kind: input, shape index: {}]   ;;  %s567_s1 = inlined_call_operand.vmem [shape: f32[289,34], index: 1, kind: input, shape index: {}]   ;;  %s568_s2 = inlined_call_operand.vmem [shape: f32[1,34], index: 2, kind: input, shape index: {}]   ;;  %s569_s3 = inlined_call_operand.hbm [shape: f32[2,34], index: 3, kind: output, shape index: {}]  }
   0x1   :  { %v35_v0 = vld [vmem:[%s567_s1 + $0x80] sm:$0xff]  ;;  %v36_v1 = vld [vmem:[%s567_s1 + $0x88] sm:$0xff]  ;;  %v37_v5 = vld [vmem:[%s567_s1 + $0x90] sm:$0xff]  ;;  %358 = vmatprep.subr.bf16.mxu1 %v401_v6  ;;  %v72_v15 = vunpack.c.l.s4 %v402_v14  ;;  %v404_v17 = vmov 0.0   ;;  %vm107_vm1 = vcmask 1040384   ;;  %vm104_vm2 = vcmask 269312  }
   0x2   :  { %v326_v2 = vpack.c.bf16 %v36_v1, %v35_v0  ;;  %v19_v3 = vld [vmem:[%s567_s1] sm:$0xff]  ;;  %v20_v4 = vld [vmem:[%s567_s1 + $0x8] sm:$0xff]  ;;  %v38_v8 = vld [vmem:[%s567_s1 + $0x98] sm:$0xff]  ;;  %323 = vmatprep.mubr.msk.f32.mxu1 %vm403_vm0, %v404_v17  ;;  %v75_v25 = vshrl.u32 %v74_v16, 7  ;;  %vm251_vm3 = vcmask 277504  }
   0x3   :  { %v328_v7 = vpack.c.bf16 %v20_v4, %v19_v3  ;;  %v21_v9 = vld [vmem:[%s567_s1 + $0x10] sm:$0xff]  ;;  %v22_v10 = vld [vmem:[%s567_s1 + $0x18] sm:$0xff]  ;;  %v330_v11 = vpack.c.bf16 %v38_v8, %v37_v5  ;;  %v39_v12 = vld [vmem:[%s567_s1 + $0xa0] sm:$0xff]  ;;  %v73_v24 = vunpack.c.0.s8 %v72_v15 }
   0x4   :  { %327 = vmatprep.subr.bf16.mxu0 %v326_v2  ;;  %v40_v13 = vld [vmem:[%s567_s1 + $0xa8] sm:$0xff]  ;;  %v332_v18 = vpack.c.bf16 %v22_v10, %v21_v9  ;;  %v23_v20 = vld [vmem:[%s567_s1 + $0x20] sm:$0xff]  ;;  %v41_v22 = vld [vmem:[%s567_s1 + $0xb0] sm:$0xff] }
   0x5   :  { %329 = vmatpush3.bf16.msra.mxu0 %v328_v7  ;;  %v334_v19 = vpack.c.bf16 %v40_v13, %v39_v12  ;;  %v24_v21 = vld [vmem:[%s567_s1 + $0x28] sm:$0xff]  ;;  %v42_v23 = vld [vmem:[%s567_s1 + $0xb8] sm:$0xff]  ;;  %v25_v28 = vld [vmem:[%s567_s1 + $0x30] sm:$0xff]  ;;  %v76_v37 = vsub.s32 %v73_v24, %v75_v25 }
   0x6   :  { %331 = vmatprep.subr.bf16.mxu0 %v330_v11  ;;  %v336_v26 = vpack.c.bf16 %v24_v21, %v23_v20  ;;  %v338_v27 = vpack.c.bf16 %v42_v23, %v41_v22  ;;  %v26_v29 = vld [vmem:[%s567_s1 + $0x38] sm:$0xff]  ;;  %v51_v30 = vld [vmem:[%s567_s1 + $0x100] sm:$0xff]  ;;  %v44_v32 = vld [vmem:[%s567_s1 + $0xc8] sm:$0xff] }
   0x7   :  { %v43_v31 = vld [vmem:[%s567_s1 + $0xc0] sm:$0xff]  ;;  %v52_v33 = vld [vmem:[%s567_s1 + $0x108] sm:$0xff]  ;;  %v340_v38 = vpack.c.bf16 %v26_v29, %v25_v28  ;;  %v45_v39 = vld [vmem:[%s567_s1 + $0xd0] sm:$0xff] }
   0x8   :  { %v27_v34 = vld [vmem:[%s567_s1 + $0x40] sm:$0xff]  ;;  %v28_v35 = vld [vmem:[%s567_s1 + $0x48] sm:$0xff]  ;;  %v359_v36 = vpack.c.bf16 %v52_v33, %v51_v30  ;;  %v46_v40 = vld [vmem:[%s567_s1 + $0xd8] sm:$0xff]  ;;  %v342_v41 = vpack.c.bf16 %v44_v32, %v43_v31 }
   0x9   :  { %333 = vmatpush3.bf16.msra.mxu0 %v332_v18  ;;  %v371_v42 = vld [vmem:[%s566_s0] ss:$6 sps:$4 sm:$0xff]   ;;  %v373_v43 = vld [vmem:[%s566_s0 + $0x4] ss:$6 sps:$4 sm:$0x33]   ;;  %v53_v44 = vld [vmem:[%s567_s1 + $0x110] sm:$0xff]  ;;  %v344_v51 = vpack.c.bf16 %v28_v35, %v27_v34  ;;  %v346_v54 = vpack.c.bf16 %v46_v40, %v45_v39 }
   0xa   :  { %335 = vmatprep.subr.bf16.mxu0 %v334_v19  ;;  %360 = vmatpush3.bf16.msra.mxu1 %v359_v36  ;;  %v374_v45 = vld [vmem:[%s566_s0 + $0xc] ss:$6 sps:$4 sm:$0xff]   ;;  %v376_v46 = vld [vmem:[%s566_s0 + $0x10] ss:$6 sps:$4 sm:$0x33]   ;;  %v54_v47 = vld [vmem:[%s567_s1 + $0x118] sm:$0xff]  ;;  %v77_v48 = vrot.slane %v371_v42, %v76_v37  ;;  %v84_v49 = vrot.slane %v373_v43, %v76_v37 }
   0xb   :  { %361 = vmatprep.subr.bf16.mxu1 %v401_v6  ;;  %v362_v50 = vpack.c.bf16 %v54_v47, %v53_v44  ;;  %v91_v52 = vrot.slane %v374_v45, %v76_v37  ;;  %v98_v53 = vrot.slane %v376_v46, %v76_v37  ;;  %v29_v55 = vld [vmem:[%s567_s1 + $0x50] sm:$0xff]  ;;  %v30_v56 = vld [vmem:[%s567_s1 + $0x58] sm:$0xff]  ;;  %v47_v57 = vld [vmem:[%s567_s1 + $0xe0] sm:$0xff] }
   0xc   :  { %v48_v58 = vld [vmem:[%s567_s1 + $0xe8] sm:$0xff]  ;;  %v55_v60 = vld [vmem:[%s567_s1 + $0x120] sm:$0x1]  ;;  %v348_v62 = vpack.c.bf16 %v30_v56, %v29_v55  ;;  %v49_v2 = vld [vmem:[%s567_s1 + $0xf0] sm:$0xff] }
   0xd   :  { %337 = vmatpush3.bf16.msra.mxu0 %v336_v26  ;;  %v100_v59 = vcombine.high %v77_v48, %v91_v52  ;;  %v101_v61 = vcombine.low %v84_v49, %v98_v53  ;;  %v350_v63 = vpack.c.bf16 %v48_v58, %v47_v57  ;;  %v31_v0 = vld [vmem:[%s567_s1 + $0x60] sm:$0xff]  ;;  %v32_v1 = vld [vmem:[%s567_s1 + $0x68] sm:$0xff]  ;;  %v50_v3 = vld [vmem:[%s567_s1 + $0xf8] sm:$0xff]  ;;  %v99_v9 = vcombine.low %v77_v48, %v91_v52 }
   0xe   :  { %339 = vmatprep.subr.bf16.mxu0 %v338_v27  ;;  %363 = vmatpush3.bf16.msra.mxu1 %v362_v50  ;;  %v352_v4 = vpack.c.bf16 %v32_v1, %v31_v0  ;;  %v354_v5 = vpack.c.bf16 %v50_v3, %v49_v2  ;;  %v33_v6 = vld [vmem:[%s567_s1 + $0x70] sm:$0xff]  ;;  %v34_v7 = vld [vmem:[%s567_s1 + $0x78] sm:$0xff]  ;;  %v269_v14 = vld [vmem:[%s568_s2] ss:$0 sm:$0xff] }
   0xf   :  { %321 = vmatprep.subr.mxu1 %v404_v17  ;;  %175 = vmatprep.mubr.f32.mxu0 %v100_v59  ;;  %v356_v8 = vpack.c.bf16 %v34_v7, %v33_v6 }
  0x11   :  { %341 = vmatpush3.bf16.msra.mxu0 %v340_v38 }
  0x12   :  { %343 = vmatprep.subr.bf16.mxu0 %v342_v41  ;;  %322 = vmatpush3.msk.msra.mxu1 %vm107_vm1, %v55_v60 }
  0x13   :  { %324 = vmatmul.mubr.msk.f32.vlgmr.msra.gmra.mrb[0].mxu1 %vm104_vm2, %v101_v61 }
  0x15   :  { %345 = vmatpush3.bf16.msra.mxu0 %v344_v51 }
  0x16   :  { %347 = vmatprep.subr.bf16.mxu0 %v346_v54 }
  0x19   :  { %349 = vmatpush3.bf16.msra.mxu0 %v348_v62 }
  0x1a   :  { %351 = vmatprep.subr.bf16.mxu0 %v350_v63 }
  0x1d   :  { %353 = vmatpush3.bf16.msra.mxu0 %v352_v4 }
  0x1e   :  { %355 = vmatprep.subr.bf16.mxu0 %v354_v5 }
  0x21   :  { %357 = vmatpush3.bf16.msra.mxu0 %v356_v8 }
  0x24   :  { %176 = vmatmul.mubr.f32.vlgmr.msra.gmra.mrb[0].mxu0 %v99_v9 }
  0xe6   :  { %v247_v10 = vpop.f32.mrb[0].mxu1 }
  0xe7   :  { %v325_v11 = vpop.f32.mrb[1].mxu1 }
  0xf7   :  { %v304_v12 = vpop.f32.mrb[0].mxu0 }
  0xf8   :  { %v305_v13 = vpop.f32.mrb[1].mxu0 }
  0xf9   :  { %v306_v15 = vadd.f32 %v305_v13, %v304_v12 }
  0xfb   :  { %v178_v16 = vadd.f32 %v306_v15, %v269_v14 }
  0xfd   :  { %v248_v17 = vadd.f32 %v247_v10, %v178_v16 }
  0xff   :  { %252 = vst.msk [vmem:[#allocation2] sm:$0xff] %vm251_vm3, %v248_v17 }
 0x100   :  { %257 = vsyncadd [#allocation3], 96  ;;  %s405_s1 = smov [#allocation2]  }
 0x101   :  { %s258_s14 = sshll.u32 %s405_s1, 4  ;;  %s259_s14 = int_to_ptr.vmem [resolvable:$true] %s258_s14 }
 0x102   :  { %s377_s15 = scalar_lea.vmem %s259_s14, 32  ;;  %s381_s16 = scalar_lea.vmem %s259_s14, 128 }
 0x103   :  { %p378_p0 = scmp.ne.s32.totalorder %s259_s14, %s377_s15  ;;  %p382_p1 = scmp.lt.s32.totalorder %s259_s14, %s259_s14 }
 0x104   :  { %p383_p2 = scmp.lt.s32.totalorder %s381_s16, %s377_s15 }
 0x106   :  { %p384_p3 = por %p383_p2, %p382_p1 }
 0x108   :  { %p385_p4 = pnand %p384_p3, %p378_p0 }
 0x10a   :  { %388 = shalt.err (!%p385_p4)
}
 0x10b   :  { %s389_s2 = scalar_lea.hbm %s569_s3, 32 }
 0x10c   :  { %p390_p5 = scmp.ne.s32.totalorder %s569_s3, %s389_s2  ;;  %p393_p6 = scmp.lt.u32.totalorder %s389_s2, %s569_s3 }
 0x10e   :  { %p395_p7 = pnand %p393_p6, %p390_p5 }
 0x110   :  { %398 = shalt.err (!%p395_p7)
}
 0x111   :  { %s406_s22 = smov 32   ;;  %s407_s23 = smov 2  }
 0x112   :  { %264 = dma.vmem_to_hbm [thread:$0]  %s259_s14, 32, %s569_s3, [#allocation3], %s406_s22, %s406_s22, %s407_s23  }
 0x113   :  { %399 = dma.done.wait [#allocation3], 128  }
 0x114   :  { %400 = vsyncadd [#allocation3], 4294967168 }
 0x115   :  { %268 = vsyncpa [#allocation3], 1 }

</bundles_post_ra>
